<compile_context>
chip_gen: v6e
topology: v6e:2x2x1
jax: 0.10.0
libtpu: 0.0.40
codegen_flags: <defaults>
</compile_context>

<pallas_src>
import functools
from collections import Counter

import numpy as np
import jax
import jax.numpy as jnp
from jax import lax
from jax.experimental import pallas as pl
from jax.experimental.pallas import tpu as pltpu


def _round_up(x, m):
    return ((x + m - 1) // m) * m


# ----------------------------------------------------------------------------
# Pallas kernel: tiled pairwise SQUARED euclidean distance (optionally on
# L2-normalized rows).  One output tile (TQ, TK) per grid step.
# ----------------------------------------------------------------------------
def _dist2_kernel(xq_ref, xk_ref, d2_ref, *, normalize: bool):
    xq = xq_ref[0].astype(jnp.float32)                      # (TQ, D)
    xk = xk_ref[0].astype(jnp.float32)                      # (TK, D)

    if normalize:
        # rsqrt is a single EUP op; eps guards all-zero (padded) rows.
        xq = xq * lax.rsqrt(jnp.sum(xq * xq, axis=-1, keepdims=True) + 1e-12)
        xk = xk * lax.rsqrt(jnp.sum(xk * xk, axis=-1, keepdims=True) + 1e-12)
        gram = lax.dot_general(
            xq, xk, (((1,), (1,)), ((), ())),
            preferred_element_type=jnp.float32)             # (TQ, TK)
        # unit-norm rows => ||a-b||^2 = 2 - 2 a.b
        d2 = 2.0 - 2.0 * gram
    else:
        gram = lax.dot_general(
            xq, xk, (((1,), (1,)), ((), ())),
            preferred_element_type=jnp.float32)
        sq_q = jnp.sum(xq * xq, axis=-1, keepdims=True)     # (TQ, 1)
        sq_k = jnp.sum(xk * xk, axis=-1, keepdims=True)     # (TK, 1)
        d2 = sq_q + jnp.transpose(sq_k) - 2.0 * gram

    # Clamp tiny negatives from float cancellation; NO sqrt (host uses d^2).
    d2_ref[0] = jnp.maximum(d2, 0.0)


def pairwise_sq_dist(x, *, normalize=True, tile=None):
    """x: [B, S, D] -> squared euclidean distance matrix [B, S, S] (float32).

    If normalize=True the rows are L2-normalized before the distance.
    """
    x = jnp.asarray(x, dtype=jnp.float32)
    B, S, D = x.shape

    # Lane-dense, MXU-friendly padding (zeros are inert for norms / Gram).
    S_pad = _round_up(max(S, 1), 128)
    D_pad = _round_up(max(D, 1), 128)
    if tile is None:
        tile = 256 if S_pad % 256 == 0 else 128
    tile = min(tile, S_pad)

    if (S_pad != S) or (D_pad != D):
        x = jnp.pad(x, ((0, 0), (0, S_pad - S), (0, D_pad - D)))

    grid = (B, S_pad // tile, S_pad // tile)
    kernel = functools.partial(_dist2_kernel, normalize=normalize)

    cost = pl.CostEstimate(
        flops=int(2 * B * S_pad * S_pad * D_pad + 4 * B * S_pad * D_pad),
        transcendentals=int(2 * B * S_pad * (S_pad // tile)),
        bytes_accessed=int(4 * B * (2 * S_pad * D_pad * (S_pad // tile)
                                    + S_pad * S_pad)),
    )

    d2 = pl.pallas_call(
        kernel,
        out_shape=jax.ShapeDtypeStruct((B, S_pad, S_pad), jnp.float32),
        grid=grid,
        in_specs=[
            pl.BlockSpec((1, tile, D_pad), lambda b, i, j: (b, i, 0)),
            pl.BlockSpec((1, tile, D_pad), lambda b, i, j: (b, j, 0)),
        ],
        out_specs=pl.BlockSpec((1, tile, tile), lambda b, i, j: (b, i, j)),
        compiler_params=pltpu.CompilerParams(
            dimension_semantics=("parallel", "parallel", "parallel")),
        cost_estimate=cost,
    )(x, x)

    return d2[:, :S, :S]


# ----------------------------------------------------------------------------
# Host-side ward agglomerative clustering (connectivity band = max_skip),
# operating directly on SQUARED distances (Lance-Williams works on d^2).
# ----------------------------------------------------------------------------
def _ward_cluster_labels_sq(d2_mat, threshold, span):
    """Connectivity-constrained ward agglomerative clustering.

    d2_mat: (n, n) SQUARED euclidean distance matrix (numpy).
    Stops merging once the best merge distance >= threshold.
    Returns integer labels (partition only; label IDs arbitrary).
    """
    n = d2_mat.shape[0]
    if n <= 1:
        return [0] * n
    thr2 = float(threshold) ** 2
    D2 = np.asarray(d2_mat, dtype=np.float64)
    active = list(range(n))
    members = {i: [i] for i in range(n)}
    sizes = {i: 1 for i in range(n)}
    conn = {i: set(j for j in range(n) if j != i and abs(i - j) <= span)
            for i in range(n)}
    d2 = {}
    for i in range(n):
        for j in range(i + 1, n):
            d2[(i, j)] = D2[i, j]
    next_id = n
    while len(active) > 1:
        best, best_d2 = None, None
        for ai in range(len(active)):
            for bi in range(ai + 1, len(active)):
                a, b = active[ai], active[bi]
                if b not in conn[a]:
                    continue
                dd = d2[(min(a, b), max(a, b))]
                if best_d2 is None or dd < best_d2:
                    best_d2, best = dd, (a, b)
        if best is None or max(best_d2, 0.0) >= thr2:
            break
        a, b = best
        na, nb = sizes[a], sizes[b]
        nid = next_id
        next_id += 1
        ab = d2[(min(a, b), max(a, b))]
        new_d2 = {}
        for k in active:
            if k in (a, b):
                continue
            nk = sizes[k]
            ka = d2[(min(a, k), max(a, k))]
            kb = d2[(min(b, k), max(b, k))]
            new_d2[(min(k, nid), max(k, nid))] = (
                (na + nk) * ka + (nb + nk) * kb - nk * ab) / (na + nb + nk)
        members[nid] = members[a] + members[b]
        sizes[nid] = na + nb
        conn[nid] = (conn[a] | conn[b]) - {a, b}
        for k in list(conn[nid]):
            conn[k].discard(a)
            conn[k].discard(b)
            conn[k].add(nid)
        active.remove(a)
        active.remove(b)
        active.append(nid)
        d2.update(new_d2)
    labels = [0] * n
    for lab, c in enumerate(active):
        for m in members[c]:
            labels[m] = lab
    return labels


# ----------------------------------------------------------------------------
# Module wrapper (mirrors the PyTorch forward; no learnable parameters exist)
# ----------------------------------------------------------------------------
class AgglomerativeClusteringChunkerPallas:
    def __init__(self, threshold=0.9, max_skip=4, normalize=True):
        self.dist_threshold = threshold
        self.span = max_skip
        self.normalize = normalize

    def __call__(self, inp, masks_dict=None, mask_special_tokens=True, **kwargs):
        assert masks_dict is not None
        padding_mask = np.asarray(masks_dict['padding_mask']).astype(np.int64)
        if not mask_special_tokens:
            keep_mask = padding_mask == 1
        else:
            keep_mask = np.asarray(
                masks_dict['regular_tokens_mask']).astype(np.int64) == 1
        special_tokens = padding_mask - keep_mask.astype(np.int64)
        full_seq_pair_mask = np.asarray(
            masks_dict['seq_pair_mask']).astype(np.int64)

        # Hot path on TPU: (optional) L2 normalization + pairwise SQUARED
        # euclidean distances.  Host compares against threshold**2.
        d2 = pairwise_sq_dist(
            jnp.asarray(inp, dtype=jnp.float32), normalize=self.normalize)
        jax.block_until_ready(d2)
        d2_np = np.asarray(d2)

        indices_to_compact = []
        B = d2_np.shape[0]
        for b in range(B):
            kept_idx = np.where(keep_mask[b])[0]
            seq_pair_mask = full_seq_pair_mask[b, keep_mask[b]]
            idxs_filtered_out = special_tokens[b, :].nonzero()[0]
            L, max_L = [], 0
            for i in list(Counter(seq_pair_mask.tolist()).keys()):
                mask = seq_pair_mask == i
                seg_idx = kept_idx[mask]
                if seg_idx.shape[0] > 1:
                    sub = d2_np[b][np.ix_(seg_idx, seg_idx)]
                    L_ = _ward_cluster_labels_sq(
                        sub, self.dist_threshold, self.span)
                else:
                    L_ = [0]
                L_ = [lab + max_L for lab in L_]
                L.extend(L_)
                max_L = max(L) + 1
            for pos in idxs_filtered_out:
                val = max(L) + 1
                L.insert(pos, val)
            ordered_idxs = [()] * (max(L) + 1)
            seen_clusters, cluster_dict, cluster_counter = [], {}, 0
            for idx, cluster_ in enumerate(L):
                if cluster_ not in seen_clusters:
                    cluster_dict[str(cluster_)] = cluster_counter
                    cluster_counter += 1
                seen_clusters.append(cluster_)
                pos = cluster_dict[str(cluster_)]
                ordered_idxs[pos] += (idx,)
            indices_to_compact.append(ordered_idxs)
        return indices_to_compact


if __name__ == "__main__":
    key = jax.random.PRNGKey(0)
    B, S, D = 2, 8, 32
    inp = jax.random.normal(key, (B, S, D), dtype=jnp.float32)

    # masks: 1 = real token / regular token; pads at the end.
    padding_mask = jnp.array(
        [[1, 1, 1, 1, 1, 1, 1, 0],
         [1, 1, 1, 1, 1, 1, 0, 0]], dtype=jnp.uint8)
    regular_tokens_mask = jnp.array(   # cls / sep excluded
        [[0, 1, 1, 1, 0, 1, 1, 0],
         [0, 1, 1, 1, 1, 0, 0, 0]], dtype=jnp.uint8)
    seq_pair_mask = jnp.array(
        [[0, 0, 0, 0, 0, 1, 1, 1],
         [0, 0, 0, 0, 0, 0, 0, 0]], dtype=jnp.uint8)
    masks = {
        'padding_mask': padding_mask,
        'regular_tokens_mask': regular_tokens_mask,
        'seq_pair_mask': seq_pair_mask,
    }

    # Run the Pallas kernel once and block on its result.
    d2 = pairwise_sq_dist(inp, normalize=True)
    jax.block_until_ready(d2)

    # Basic sanity on the kernel output: symmetric, ~zero diagonal, bounded by 4.
    d2_np = np.asarray(d2)
    assert d2_np.shape == (B, S, S)
    assert np.allclose(d2_np, np.swapaxes(d2_np, 1, 2), atol=1e-4)
    assert np.all(np.abs(np.diagonal(d2_np, axis1=1, axis2=2)) < 1e-4)
    assert np.all(d2_np <= 4.0 + 1e-4) and np.all(d2_np >= 0.0)

    chunker = AgglomerativeClusteringChunkerPallas(
        threshold=0.9, max_skip=4, normalize=True)
    out = chunker(inp, masks_dict=masks, mask_special_tokens=True)

    assert isinstance(out, list) and len(out) == B
    for groups in out:
        all_idx = sorted(i for tup in groups for i in tup)
        assert all_idx == list(range(len(all_idx)))  # partition of non-pad tokens
    print("KERNEL_OK")
</pallas_src>

<mosaic_0001>
module attributes {stable_mosaic.version = 11 : i64} {
  func.func @_dist2_kernel(%arg0: i32, %arg1: i32, %arg2: i32, %arg3: memref<1x128x128xf32, #tpu.memory_space<vmem>>, %arg4: memref<1x128x128xf32, #tpu.memory_space<vmem>>, %arg5: memref<1x128x128xf32, #tpu.memory_space<vmem>>) attributes {dimension_semantics = [#tpu.dimension_semantics<parallel>, #tpu.dimension_semantics<parallel>, #tpu.dimension_semantics<parallel>], iteration_bounds = array<i64: 2, 1, 1>, scalar_prefetch = 0 : i64, scratch_operands = 0 : i64, tpu.core_type = #tpu.core_type<tc>, window_params = [{transform_indices = @transform_0, window_bounds = array<i64: 1, 128, 128>}, {transform_indices = @transform_1, window_bounds = array<i64: 1, 128, 128>}, {transform_indices = @transform_2, window_bounds = array<i64: 1, 128, 128>}]} {
    %c0 = arith.constant 0 : index
    %c0_0 = arith.constant 0 : index
    %c0_1 = arith.constant 0 : index
    %0 = vector.load %arg3[%c0, %c0_0, %c0_1] : memref<1x128x128xf32, #tpu.memory_space<vmem>>, vector<1x128x128xf32>
    %1 = vector.shape_cast %0 : vector<1x128x128xf32> to vector<128x128xf32>
    %c0_2 = arith.constant 0 : index
    %c0_3 = arith.constant 0 : index
    %c0_4 = arith.constant 0 : index
    %2 = vector.load %arg4[%c0_2, %c0_3, %c0_4] : memref<1x128x128xf32, #tpu.memory_space<vmem>>, vector<1x128x128xf32>
    %3 = vector.shape_cast %2 : vector<1x128x128xf32> to vector<128x128xf32>
    %4 = arith.mulf %1, %1 : vector<128x128xf32>
    %cst = arith.constant dense<0.000000e+00> : vector<128xf32>
    %5 = vector.multi_reduction <add>, %4, %cst [1] : vector<128x128xf32> to vector<128xf32>
    %6 = vector.shape_cast %5 : vector<128xf32> to vector<128x1xf32>
    %cst_5 = arith.constant 9.99999996E-13 : f32
    %7 = vector.broadcast %cst_5 : f32 to vector<128x1xf32>
    %8 = arith.addf %6, %7 : vector<128x1xf32>
    %9 = math.rsqrt %8 : vector<128x1xf32>
    %10 = vector.broadcast %9 : vector<128x1xf32> to vector<128x128xf32>
    %11 = arith.mulf %1, %10 : vector<128x128xf32>
    %12 = arith.mulf %3, %3 : vector<128x128xf32>
    %cst_6 = arith.constant dense<0.000000e+00> : vector<128xf32>
    %13 = vector.multi_reduction <add>, %12, %cst_6 [1] : vector<128x128xf32> to vector<128xf32>
    %14 = vector.shape_cast %13 : vector<128xf32> to vector<128x1xf32>
    %cst_7 = arith.constant 9.99999996E-13 : f32
    %15 = vector.broadcast %cst_7 : f32 to vector<128x1xf32>
    %16 = arith.addf %14, %15 : vector<128x1xf32>
    %17 = math.rsqrt %16 : vector<128x1xf32>
    %18 = vector.broadcast %17 : vector<128x1xf32> to vector<128x128xf32>
    %19 = arith.mulf %3, %18 : vector<128x128xf32>
    %cst_8 = arith.constant dense<0.000000e+00> : vector<128x128xf32>
    %20 = tpu.matmul %11, %19, %cst_8 {dimension_numbers = #tpu.dot_dimension_numbers<[1], [1], [0], [0], [0, 0, 1, 0], [], []>} : vector<128x128xf32>, vector<128x128xf32>, vector<128x128xf32> -> vector<128x128xf32>
    %cst_9 = arith.constant 2.000000e+00 : f32
    %21 = vector.broadcast %cst_9 : f32 to vector<128x128xf32>
    %22 = arith.mulf %21, %20 : vector<128x128xf32>
    %cst_10 = arith.constant 2.000000e+00 : f32
    %23 = vector.broadcast %cst_10 : f32 to vector<128x128xf32>
    %24 = arith.subf %23, %22 : vector<128x128xf32>
    %cst_11 = arith.constant 0.000000e+00 : f32
    %25 = vector.broadcast %cst_11 : f32 to vector<128x128xf32>
    %26 = arith.maximumf %24, %25 : vector<128x128xf32>
    %c0_12 = arith.constant 0 : index
    %c0_13 = arith.constant 0 : index
    %c0_14 = arith.constant 0 : index
    %27 = vector.load %arg5[%c0_12, %c0_13, %c0_14] : memref<1x128x128xf32, #tpu.memory_space<vmem>>, vector<1x128x128xf32>
    %28 = vector.shape_cast %27 : vector<1x128x128xf32> to vector<128x128xf32>
    %29 = vector.shape_cast %26 : vector<128x128xf32> to vector<1x128x128xf32>
    tpu.vector_store %arg5[%c0_12, %c0_13, %c0_14], %29 {strides = array<i32>} : memref<1x128x128xf32, #tpu.memory_space<vmem>>, vector<1x128x128xf32>,
    return
  }
  func.func @transform_0(%arg0: i32, %arg1: i32, %arg2: i32) -> (i32, i32, i32) {
    %c0_i32 = arith.constant 0 : i32
    %c0_i32_0 = arith.constant 0 : i32
    return %arg0, %arg1, %c0_i32 : i32, i32, i32
  }
  func.func @transform_1(%arg0: i32, %arg1: i32, %arg2: i32) -> (i32, i32, i32) {
    %c0_i32 = arith.constant 0 : i32
    %c0_i32_0 = arith.constant 0 : i32
    return %arg0, %arg2, %c0_i32 : i32, i32, i32
  }
  func.func @transform_2(%arg0: i32, %arg1: i32, %arg2: i32) -> (i32, i32, i32) {
    %c0_i32 = arith.constant 0 : i32
    return %arg0, %arg1, %arg2 : i32, i32, i32
  }
}

</mosaic_0001>

<bundles_post_ra>
// kernel: tpu_custom_call.1
= control target key start
LH: loop header
LB: loop body
LE: loop exit
PB: predicated region body
PF: predicated region fallthrough
CT: control target
= control target key end

     0   :  { %7 = vsyncpa [#allocation3], 0  ;;  %s1648_s0 = inlined_call_operand.hbm [shape: f32[2,128,128], index: 0, kind: input, shape index: {}]   ;;  %s1649_s1 = inlined_call_operand.hbm [shape: f32[2,128,128], index: 1, kind: input, shape index: {}]   ;;  %s1650_s2 = inlined_call_operand.hbm [shape: f32[2,128,128], index: 2, kind: output, shape index: {}]  }
   0x1   :  { %9 = vsyncpa [#allocation3 + $0x1], 0 }
   0x2   :  { %10 = vsyncpa [#allocation6], 0 }
   0x3   :  { %12 = vsyncpa [#allocation6 + $0x1], 0 }
   0x4   :  { %13 = vsyncpa [#allocation4], 0 }
   0x5   :  { %15 = vsyncpa [#allocation4 + $0x1], 0  ;;  %s1244_s9 = smov 0   ;;  %s1246_s10 = smov 0  }
   0x6   :  { %s1248_s11 = smov 0   ;;  %s1250_s12 = smov 0  }
   0x7   :  { %s1252_s13 = smov 0   ;;  %s1254_s14 = smov 0  }
   0x8 LB: > { %s803_s15 = sadd.s32 4294967295, %s1220_s14   ;;  %s804_s16 = sadd.s32 4294967294, %s1220_s14   ;;  %s1220_s14 = sphi %s1254_s14, %s21_s14   ;;  %s1216_s13 = sphi %s1252_s13, %s1661_s13   ;;  %s1212_s12 = sphi %s1250_s12, %s1660_s12   ;;  %s1208_s11 = sphi %s1248_s11, %s1659_s11   ;;  %s1204_s10 = sphi %s1246_s10, %s1658_s10   ;;  %s1200_s9 = sphi %s1244_s9, %s1657_s9  }
   0x9   : > { %s40_s17 = sadd.s32 1, %s1216_s13  ;;  %s49_s18 = sadd.s32 1, %s1208_s11 }
   0xa   : > { %p42_p0 = scmp.ge.s32.totalorder %s40_s17, 2  ;;  %p56_p1 = scmp.ne.s32.totalorder %s1208_s11, %s1204_s10 }
   0xb   : > { %p57_p2 = scmp.eq.s32.totalorder %s1220_s14, 0  ;;  %p62_p3 = scmp.ne.s32.totalorder %s1204_s10, %s1200_s9 }
   0xc   : > { %s1663_s17 = smov (%p42_p0, %s40_s17), 0  ;;  %p63_p5 = scmp.eq.s32.totalorder %s803_s15, 0 }
   0xd   : > { %p1285_p4 = por %p57_p2, %p56_p1  ;;  %s44_s20 = ssub.s32 %s1216_s13, %s1663_s17 }
   0xe   : > { %p118_p6 = scmp.eq.s32.totalorder %s803_s15, 1  ;;  %p47_p7 = scmp.eq.s32.totalorder %s44_s20, 0 }
   0xf   : > { %p1291_p8 = por %p63_p5, %p62_p3  ;;  %p124_p10 = scmp.eq.s32.totalorder %s804_s16, 1 }
  0x10   : > { %p1295_p9 = por %p118_p6, %p56_p1  ;;  %p806_p12 = scmp.ge.s32.totalorder %s1220_s14, 2 }
  0x11   : > { %s1300_s23 = scalar_select %p47_p7, %s1208_s11, %s49_s18  }
  0x12   : > { %p1302_p11 = por %p124_p10, %p62_p3  ;;  %p962_p13 = scmp.lt.s32.totalorder %s1220_s14, 2 }
  0x13   : > { %s1309_s25 = sand.u32 1, %s1208_s11   ;;  %s822_s27 = sshll.u32 %s1216_s13, 11 }
  0x14   : > { %s807_s26 = sshll.u32 %s1309_s25, 7  ;;  %s156_s30 = scalar_lea.hbm %s1648_s0, %s822_s27 }
  0x15   : > { %s148_s3 = scalar_lea.vmem [#allocation2], %s807_s26  ;;  %p1322_p0 = pnand %p962_p13, %p1285_p4 }
  0x16   : > { %s157_s4 = sshll.u32 %s148_s3, 4  ;;  %p813_p1 = scmp.ge.s32.totalorder %s1220_s14, 1  ;;  %s158_s4 = int_to_ptr.vmem [resolvable:$true] %s157_s4 }
  0x17   : > { %s145_s6 = scalar_lea.sflag [#allocation3], %s1309_s25  ;;  %p1082_p2 = pneg %p1322_p0 }
  0x18   : > { %s1093_s7 = scalar_lea.vmem %s158_s4, 2048  ;;  %s1222_s8 = smov [#allocation2]  }
  0x19   : > { %p1094_p3 = scmp.ne.s32.totalorder %s158_s4, %s1093_s7  ;;  %s1098_s15 = sshll.u32 %s1222_s8, 4  ;;  %s1099_s15 = int_to_ptr.vmem [resolvable:$false] %s1098_s15 }
  0x1a   : > { %s1100_s16 = scalar_lea.vmem %s1099_s15, 4096  ;;  %p1101_p4 = scmp.lt.s32.totalorder %s158_s4, %s1099_s15 }
  0x1b   : > { %p1096_p5 = pnand %p1094_p3, %p1082_p2  ;;  %p1102_p7 = scmp.lt.s32.totalorder %s1100_s16, %s1093_s7 }
  0x1d   : > { %p1097_p6 = pneg %p1096_p5  ;;  %p1103_p10 = por %p1102_p7, %p1101_p4 }
  0x1f   : > { %p1104_p13 = pnand %p1103_p10, %p1097_p6 }
  0x21   : > { %1107 = shalt.err (!%p1104_p13)
}
  0x22   : > { %s1223_s18 = smov 128   ;;  %s1224_s19 = smov 8  }
  0x23   : > { %954 = dma.hbm_to_vmem [thread:$0]  (!%p1322_p0), %s156_s30, 2048, %s158_s4, %s145_s6, %s1223_s18, %s1223_s18, %s1224_s19  }
  0x24   : > { %p188_p3 = scmp.lt.s32.totalorder %s1220_s14, 3  ;;  %s179_s29 = scalar_lea.hbm %s1649_s1, %s822_s27 }
  0x25   : > { %s171_s7 = scalar_lea.vmem [#allocation5], %s807_s26  ;;  %s168_s15 = scalar_lea.sflag [#allocation6], %s1309_s25 }
  0x26   : > { %p1343_p5 = pnand %p813_p1, %p188_p3  ;;  %s180_s8 = sshll.u32 %s171_s7, 4  ;;  %s181_s8 = int_to_ptr.vmem [resolvable:$true] %s180_s8 }
  0x27   : > { %s1121_s16 = scalar_lea.vmem %s181_s8, 2048  ;;  %s1225_s30 = smov [#allocation5]  }
  0x28   : > { %p1122_p6 = scmp.ne.s32.totalorder %s181_s8, %s1121_s16  ;;  %s1126_s4 = sshll.u32 %s1225_s30, 4  ;;  %s1127_s4 = int_to_ptr.vmem [resolvable:$false] %s1126_s4 }
  0x29   : > { %s1128_s27 = scalar_lea.vmem %s1127_s4, 4096  ;;  %p1129_p10 = scmp.lt.s32.totalorder %s181_s8, %s1127_s4 }
  0x2a   : > { %p1124_p4 = pnand %p1122_p6, %p1082_p2  ;;  %p1130_p1 = scmp.lt.s32.totalorder %s1128_s27, %s1121_s16 }
  0x2c   : > { %p1125_p7 = pneg %p1124_p4  ;;  %p1131_p13 = por %p1130_p1, %p1129_p10 }
  0x2e   : > { %p1132_p3 = pnand %p1131_p13, %p1125_p7 }
  0x30   : > { %1135 = shalt.err (!%p1132_p3)
}
  0x31   : > { %957 = dma.hbm_to_vmem [thread:$0]  (!%p1322_p0), %s179_s29, 2048, %s181_s8, %s168_s15, %s1223_s18, %s1223_s18, %s1224_s19  }
  0x32   : > { %192 = sbr.rel (%p1343_p5) target bundleno = 509 (0x1fd), region = 28  ;;  %s1358_s25 = sand.u32 (!%p1343_p5), 1, %s1204_s10  }
  0x33   : > { %s1361_s26 = sshll.u32 (!%p1343_p5), %s1358_s25, 7  ;;  %s195_s6 = scalar_lea.sflag (!%p1343_p5), [#allocation3], %s1358_s25 }
  0x34   : > { %s1365_s20 = scalar_lea.vmem (!%p1343_p5), [#allocation2], %s1361_s26 }
  0x37   : > { %1187 = dma.done.wait (%p1291_p8), %s195_s6, 2048  }
  0x38   : > { %1189 = vsyncadd (%p1291_p8), %s195_s6, 4294965248  ;;  %s204_s5 = scalar_lea.sflag [#allocation6], %s1358_s25  ;;  %s1373_s18 = scalar_lea.vmem [#allocation5], %s1361_s26 }
  0x39   : > { %1191 = dma.done.wait (%p1291_p8), %s204_s5, 2048  }
  0x3a   : > { %1193 = vsyncadd (%p1291_p8), %s204_s5, 4294965248  ;;  %v1380_v0 = vld [vmem:[%s1373_s18 + $0x78] sm:$0xff]  ;;  %v1383_v1 = vld [vmem:[%s1373_s18 + $0x70] sm:$0xff]  ;;  %s1575_s21 = scalar_lea.vmem [#allocation7], %s1361_s26  ;;  %s824_s19 = sshll.u32 %s1212_s12, 11 }
  0x3b   : > { %v1386_v2 = vld [vmem:[%s1373_s18 + $0x68] sm:$0xff]  ;;  %v379_v3 = vmul.f32 %v1380_v0, %v1380_v0  ;;  %v1393_v5 = vld [vmem:[%s1373_s18 + $0x60] sm:$0xff]  ;;  %v378_v6 = vmul.f32 %v1383_v1, %v1383_v1  ;;  %v1400_v8 = vld [vmem:[%s1373_s18 + $0x58] sm:$0xff]  ;;  %s686_s28 = sshll.u32 %s1575_s21, 4  ;;  %s1594_s7 = scalar_lea.hbm %s1650_s2, %s824_s19  ;;  %s1596_s28 = int_to_ptr.vmem [resolvable:$true] %s686_s28 }
  0x3c   : > { %v377_v4 = vmul.f32 %v1386_v2, %v1386_v2  ;;  %v376_v7 = vmul.f32 %v1393_v5, %v1393_v5  ;;  %v1403_v9 = vld [vmem:[%s1373_s18 + $0x50] sm:$0xff]  ;;  %v375_v10 = vmul.f32 %v1400_v8, %v1400_v8  ;;  %v1410_v12 = vld [vmem:[%s1373_s18 + $0x48] sm:$0xff]  ;;  %v1413_v13 = vld [vmem:[%s1373_s18 + $0x40] sm:$0xff]  ;;  %s670_s12 = scalar_lea.sflag [#allocation4], %s1358_s25  ;;  %s1136_s8 = scalar_lea.vmem %s1596_s28, 2048 }
  0x3d   : > { %410 = vadd.xlane.f32.xlu0 %v379_v3  ;;  %v374_v11 = vmul.f32 %v1403_v9, %v1403_v9  ;;  %v373_v14 = vmul.f32 %v1410_v12, %v1410_v12  ;;  %v372_v15 = vmul.f32 %v1413_v13, %v1413_v13  ;;  %v1420_v16 = vld [vmem:[%s1373_s18 + $0x38] sm:$0xff]  ;;  %v1423_v17 = vld [vmem:[%s1373_s18 + $0x30] sm:$0xff]  ;;  %v1430_v20 = vld [vmem:[%s1373_s18 + $0x28] sm:$0xff]  ;;  %p1137_p8 = scmp.ne.s32.totalorder %s1596_s28, %s1136_s8  ;;  %s1226_s15 = smov [#allocation7]  }
  0x3e   : > { %406 = vadd.xlane.f32.xlu1 %v377_v4  ;;  %v371_v18 = vmul.f32 %v1420_v16, %v1420_v16  ;;  %v370_v19 = vmul.f32 %v1423_v17, %v1423_v17  ;;  %v1433_v21 = vld [vmem:[%s1373_s18 + $0x20] sm:$0xff]  ;;  %v369_v22 = vmul.f32 %v1430_v20, %v1430_v20  ;;  %v1440_v24 = vld [vmem:[%s1373_s18 + $0x18] sm:$0xff]  ;;  %v1443_v25 = vld [vmem:[%s1373_s18 + $0x10] sm:$0xff]  ;;  %s1140_s16 = sshll.u32 %s1226_s15, 4  ;;  %s1141_s16 = int_to_ptr.vmem [resolvable:$false] %s1140_s16 }
  0x3f   : > { %v368_v23 = vmul.f32 %v1433_v21, %v1433_v21  ;;  %v367_v26 = vmul.f32 %v1440_v24, %v1440_v24  ;;  %v366_v27 = vmul.f32 %v1443_v25, %v1443_v25  ;;  %v1450_v28 = vld [vmem:[%s1373_s18 + $0x8] sm:$0xff]  ;;  %v1453_v29 = vld [vmem:[%s1373_s18] sm:$0xff]  ;;  %v1480_v40 = vld [vmem:[%s1365_s20 + $0x50] sm:$0xff]  ;;  %p1138_p0 = pnand %p1137_p8, %p1295_p9  ;;  %s1142_s30 = scalar_lea.vmem %s1141_s16, 4096 }
  0x40   : > { %v365_v30 = vmul.f32 %v1450_v28, %v1450_v28  ;;  %v364_v31 = vmul.f32 %v1453_v29, %v1453_v29  ;;  %v1460_v32 = vld [vmem:[%s1365_s20 + $0x40] sm:$0xff]  ;;  %v1470_v36 = vld [vmem:[%s1365_s20 + $0x48] sm:$0xff]  ;;  %v1483_v41 = vld [vmem:[%s1365_s20 + $0x10] sm:$0xff]  ;;  %v278_v42 = vmul.f32 %v1480_v40, %v1480_v40  ;;  %p1143_p5 = scmp.lt.s32.totalorder %s1596_s28, %s1141_s16  ;;  %p1144_p6 = scmp.lt.s32.totalorder %s1142_s30, %s1136_s8 }
  0x41   : > { %408 = vadd.xlane.f32.xlu0 %v378_v6  ;;  %v1463_v33 = vld [vmem:[%s1365_s20] sm:$0xff]  ;;  %v276_v34 = vmul.f32 %v1460_v32, %v1460_v32  ;;  %v1473_v37 = vld [vmem:[%s1365_s20 + $0x8] sm:$0xff]  ;;  %v277_v38 = vmul.f32 %v1470_v36, %v1470_v36  ;;  %v270_v43 = vmul.f32 %v1483_v41, %v1483_v41  ;;  %v1490_v44 = vld [vmem:[%s1365_s20 + $0x58] sm:$0xff]  ;;  %p1139_p2 = pneg %p1138_p0 }
  0x42   : > { %404 = vadd.xlane.f32.xlu1 %v376_v7  ;;  %v268_v35 = vmul.f32 %v1463_v33, %v1463_v33  ;;  %v269_v39 = vmul.f32 %v1473_v37, %v1473_v37  ;;  %v1493_v45 = vld [vmem:[%s1365_s20 + $0x18] sm:$0xff]  ;;  %v279_v46 = vmul.f32 %v1490_v44, %v1490_v44  ;;  %v1500_v48 = vld [vmem:[%s1365_s20 + $0x60] sm:$0xff]  ;;  %v1510_v52 = vld [vmem:[%s1365_s20 + $0x68] sm:$0xff]  ;;  %p1145_p4 = por %p1144_p6, %p1143_p5 }
  0x43   : > { %v271_v47 = vmul.f32 %v1493_v45, %v1493_v45  ;;  %v1503_v49 = vld [vmem:[%s1365_s20 + $0x20] sm:$0xff]  ;;  %v280_v50 = vmul.f32 %v1500_v48, %v1500_v48  ;;  %v1513_v53 = vld [vmem:[%s1365_s20 + $0x28] sm:$0xff]  ;;  %v281_v54 = vmul.f32 %v1510_v52, %v1510_v52  ;;  %v1520_v56 = vld [vmem:[%s1365_s20 + $0x70] sm:$0xff] }
  0x44   : > { %v272_v51 = vmul.f32 %v1503_v49, %v1503_v49  ;;  %v273_v55 = vmul.f32 %v1513_v53, %v1513_v53  ;;  %v1523_v57 = vld [vmem:[%s1365_s20 + $0x30] sm:$0xff]  ;;  %v282_v58 = vmul.f32 %v1520_v56, %v1520_v56  ;;  %v1530_v60 = vld [vmem:[%s1365_s20 + $0x78] sm:$0xff]  ;;  %p1146_p7 = pnand %p1145_p4, %p1139_p2 }
  0x45   : > { %402 = vadd.xlane.f32.xlu0 %v375_v10  ;;  %v274_v59 = vmul.f32 %v1523_v57, %v1523_v57  ;;  %v1533_v61 = vld [vmem:[%s1365_s20 + $0x38] sm:$0xff]  ;;  %v283_v62 = vmul.f32 %v1530_v60, %v1530_v60 }
  0x46   : > { %400 = vadd.xlane.f32.xlu1 %v374_v11  ;;  %v275_v63 = vmul.f32 %v1533_v61, %v1533_v61 }
  0x49   : > { %398 = vadd.xlane.f32.xlu0 %v373_v14 }
  0x4a   : > { %396 = vadd.xlane.f32.xlu1 %v372_v15 }
  0x4d   : > { %394 = vadd.xlane.f32.xlu0 %v371_v18 }
  0x4e   : > { %392 = vadd.xlane.f32.xlu1 %v370_v19 }
  0x51   : > { %390 = vadd.xlane.f32.xlu0 %v369_v22 }
  0x52   : > { %388 = vadd.xlane.f32.xlu1 %v368_v23 }
  0x55   : > { %386 = vadd.xlane.f32.xlu0 %v367_v26 }
  0x56   : > { %384 = vadd.xlane.f32.xlu1 %v366_v27 }
  0x59   : > { %382 = vadd.xlane.f32.xlu0 %v365_v30 }
  0x5a   : > { %380 = vadd.xlane.f32.xlu1 %v364_v31 }
  0x5d   : > { %284 = vadd.xlane.f32.xlu0 %v268_v35 }
  0x5e   : > { %300 = vadd.xlane.f32.xlu1 %v276_v34 }
  0x61   : > { %286 = vadd.xlane.f32.xlu0 %v269_v39 }
  0x62   : > { %302 = vadd.xlane.f32.xlu1 %v277_v38 }
  0x65   : > { %288 = vadd.xlane.f32.xlu0 %v270_v43 }
  0x66   : > { %304 = vadd.xlane.f32.xlu1 %v278_v42 }
  0x69   : > { %290 = vadd.xlane.f32.xlu0 %v271_v47 }
  0x6a   : > { %306 = vadd.xlane.f32.xlu1 %v279_v46 }
  0x6d   : > { %292 = vadd.xlane.f32.xlu0 %v272_v51 }
  0x6e   : > { %308 = vadd.xlane.f32.xlu1 %v280_v50 }
  0x71   : > { %294 = vadd.xlane.f32.xlu0 %v273_v55 }
  0x72   : > { %310 = vadd.xlane.f32.xlu1 %v281_v54 }
  0x75   : > { %296 = vadd.xlane.f32.xlu0 %v274_v59 }
  0x76   : > { %312 = vadd.xlane.f32.xlu1 %v282_v58 }
  0x79   : > { %298 = vadd.xlane.f32.xlu0 %v275_v63 }
  0x7a   : > { %314 = vadd.xlane.f32.xlu1 %v283_v62 }
  0xc6   : > { %v411_v3 = vpop.xlane.xlu0 %410 }
  0xc7   : > { %v407_v4 = vpop.xlane.xlu1 %406  ;;  %v427_v6 = vadd.f32 1e-12, %v411_v3 }
  0xc8   : > { %v425_v7 = vadd.f32 1e-12, %v407_v4 }
  0xc9   : > { %1016 = vrsqrt.f32 %v427_v6 }
  0xca   : > { %v409_v10 = vpop.xlane.xlu0 %408  ;;  %1018 = vrsqrt.f32 %v425_v7 }
  0xcb   : > { %v405_v11 = vpop.xlane.xlu1 %404  ;;  %v426_v14 = vadd.f32 1e-12, %v409_v10 }
  0xcc   : > { %v424_v15 = vadd.f32 1e-12, %v405_v11 }
  0xcd   : > { %1020 = vrsqrt.f32 %v426_v14 }
  0xce   : > { %v403_v18 = vpop.xlane.xlu0 %402  ;;  %1022 = vrsqrt.f32 %v424_v15 }
  0xcf   : > { %v401_v19 = vpop.xlane.xlu1 %400  ;;  %v423_v22 = vadd.f32 1e-12, %v403_v18 }
  0xd0   : > { %v422_v27 = vadd.f32 1e-12, %v401_v19 }
  0xd1   : > { %1024 = vrsqrt.f32 %v423_v22 }
  0xd2   : > { %v399_v23 = vpop.xlane.xlu0 %398  ;;  %1026 = vrsqrt.f32 %v422_v27 }
  0xd3   : > { %v397_v26 = vpop.xlane.xlu1 %396  ;;  %v421_v38 = vadd.f32 1e-12, %v399_v23 }
  0xd4   : > { %v420_v51 = vadd.f32 1e-12, %v397_v26 }
  0xd5   : > { %1028 = vrsqrt.f32 %v421_v38 }
  0xd6   : > { %v1017_v30 = vpop.eup %1016  ;;  %v395_v31 = vpop.xlane.xlu0 %394  ;;  %1030 = vrsqrt.f32 %v420_v51 }
  0xd7   : > { %v393_v34 = vpop.xlane.xlu1 %392  ;;  %v459_v35 = vmul.f32 %v1017_v30, %v1380_v0  ;;  %v1019_v39 = vpop.eup %1018  ;;  %v419_v59 = vadd.f32 1e-12, %v395_v31 }
  0xd8   : > { %v457_v50 = vmul.f32 %v1019_v39, %v1386_v2  ;;  %v418_v4 = vadd.f32 1e-12, %v393_v34 }
  0xd9   : > { %857 = vmatprep.subr.mxu0 %v459_v35  ;;  %913 = vmatprep.subr.mxu1 %v459_v35  ;;  %1032 = vrsqrt.f32 %v419_v59 }
  0xda   : > { %v1021_v42 = vpop.eup %1020  ;;  %858 = vmatpush3.xpose.msra.mxu0 %v459_v35  ;;  %929 = vmatpush3.xpose.msra.mxu1 %v459_v35  ;;  %v391_v43 = vpop.xlane.xlu0 %390  ;;  %1034 = vrsqrt.f32 %v418_v4 }
  0xdb   : > { %v389_v46 = vpop.xlane.xlu1 %388  ;;  %v458_v47 = vmul.f32 %v1021_v42, %v1383_v1  ;;  %v1023_v54 = vpop.eup %1022  ;;  %v417_v15 = vadd.f32 1e-12, %v391_v43 }
  0xdc   : > { %v456_v58 = vmul.f32 %v1023_v54, %v1393_v5  ;;  %v416_v23 = vadd.f32 1e-12, %v389_v46 }
  0xdd   : > { %859 = vmatprep.subr.mxu0 %v458_v47  ;;  %914 = vmatprep.subr.mxu1 %v458_v47 }
  0xde   : > { %860 = vmatpush3.xpose.msra.mxu0 %v458_v47  ;;  %930 = vmatpush3.xpose.msra.mxu1 %v458_v47  ;;  %v387_v0 = vpop.xlane.xlu0 %386  ;;  %v1025_v62 = vpop.eup %1024 }
  0xdf   : > { %v385_v55 = vpop.xlane.xlu1 %384  ;;  %861 = vmatprep.subr.mxu0 %v457_v50  ;;  %915 = vmatprep.subr.mxu1 %v457_v50  ;;  %v455_v2 = vmul.f32 %v1025_v62, %v1400_v8  ;;  %v1027_v3 = vpop.eup %1026  ;;  %v415_v31 = vadd.f32 1e-12, %v387_v0 }
  0xe0   : > { %v454_v5 = vmul.f32 %v1027_v3, %v1403_v9  ;;  %v414_v39 = vadd.f32 1e-12, %v385_v55 }
  0xe2   : > { %862 = vmatpush3.xpose.msra.mxu0 %v457_v50  ;;  %931 = vmatpush3.xpose.msra.mxu1 %v457_v50  ;;  %v383_v1 = vpop.xlane.xlu0 %382  ;;  %v1029_v14 = vpop.eup %1028 }
  0xe3   : > { %v1543_v63 = vpop.xlane.xlu1 %380  ;;  %863 = vmatprep.subr.mxu0 %v456_v58  ;;  %916 = vmatprep.subr.mxu1 %v456_v58  ;;  %v453_v19 = vmul.f32 %v1029_v14, %v1410_v12  ;;  %v1031_v22 = vpop.eup %1030  ;;  %v413_v51 = vadd.f32 1e-12, %v383_v1 }
  0xe4   : > { %v452_v27 = vmul.f32 %v1031_v22, %v1413_v13  ;;  %v412_v0 = vadd.f32 1e-12, %v1543_v63 }
  0xe6   : > { %864 = vmatpush3.xpose.msra.mxu0 %v456_v58  ;;  %932 = vmatpush3.xpose.msra.mxu1 %v456_v58  ;;  %v285_v7 = vpop.xlane.xlu0 %284  ;;  %v1033_v30 = vpop.eup %1032 }
  0xe7   : > { %v301_v6 = vpop.xlane.xlu1 %300  ;;  %865 = vmatprep.subr.mxu0 %v455_v2  ;;  %917 = vmatprep.subr.mxu1 %v455_v2  ;;  %v316_v11 = vadd.f32 1e-12, %v285_v7  ;;  %v451_v12 = vmul.f32 %v1033_v30, %v1420_v16  ;;  %v1035_v38 = vpop.eup %1034 }
  0xe8   : > { %v324_v10 = vadd.f32 1e-12, %v301_v6  ;;  %v450_v54 = vmul.f32 %v1035_v38, %v1423_v17 }
  0xea   : > { %1036 = vrsqrt.f32 %v324_v10  ;;  %866 = vmatpush3.xpose.msra.mxu0 %v455_v2  ;;  %933 = vmatpush3.xpose.msra.mxu1 %v455_v2  ;;  %v287_v18 = vpop.xlane.xlu0 %286 }
  0xeb   : > { %1038 = vrsqrt.f32 %v316_v11  ;;  %v303_v8 = vpop.xlane.xlu1 %302  ;;  %867 = vmatprep.subr.mxu0 %v454_v5  ;;  %918 = vmatprep.subr.mxu1 %v454_v5  ;;  %v317_v59 = vadd.f32 1e-12, %v287_v18 }
  0xec   : > { %1040 = vrsqrt.f32 %v417_v15  ;;  %v325_v17 = vadd.f32 1e-12, %v303_v8 }
  0xed   : > { %1042 = vrsqrt.f32 %v416_v23 }
  0xee   : > { %868 = vmatpush3.xpose.msra.mxu0 %v454_v5  ;;  %934 = vmatpush3.xpose.msra.mxu1 %v454_v5  ;;  %v289_v26 = vpop.xlane.xlu0 %288  ;;  %1044 = vrsqrt.f32 %v415_v31 }
  0xef   : > { %v305_v9 = vpop.xlane.xlu1 %304  ;;  %869 = vmatprep.subr.mxu0 %v453_v19  ;;  %919 = vmatprep.subr.mxu1 %v453_v19  ;;  %1046 = vrsqrt.f32 %v414_v39  ;;  %v318_v3 = vadd.f32 1e-12, %v289_v26 }
  0xf0   : > { %1048 = vrsqrt.f32 %v413_v51  ;;  %v326_v2 = vadd.f32 1e-12, %v305_v9 }
  0xf1   : > { %1050 = vrsqrt.f32 %v412_v0 }
  0xf2   : > { %870 = vmatpush3.xpose.msra.mxu0 %v453_v19  ;;  %935 = vmatpush3.xpose.msra.mxu1 %v453_v19  ;;  %v291_v35 = vpop.xlane.xlu0 %290  ;;  %1052 = vrsqrt.f32 %v325_v17 }
  0xf3   : > { %v307_v34 = vpop.xlane.xlu1 %306  ;;  %871 = vmatprep.subr.mxu0 %v452_v27  ;;  %920 = vmatprep.subr.mxu1 %v452_v27  ;;  %1054 = vrsqrt.f32 %v317_v59  ;;  %v319_v6 = vadd.f32 1e-12, %v291_v35 }
  0xf4   : > { %v327_v63 = vadd.f32 1e-12, %v307_v34  ;;  %1056 = vrsqrt.f32 %v326_v2 }
  0xf5   : > { %1058 = vrsqrt.f32 %v318_v3 }
  0xf6   : > { %872 = vmatpush3.xpose.msra.mxu0 %v452_v27  ;;  %936 = vmatpush3.xpose.msra.mxu1 %v452_v27  ;;  %v293_v47 = vpop.xlane.xlu0 %292  ;;  %1060 = vrsqrt.f32 %v327_v63 }
  0xf7   : > { %v1037_v42 = vpop.eup %1036  ;;  %873 = vmatprep.subr.mxu0 %v451_v12  ;;  %921 = vmatprep.subr.mxu1 %v451_v12  ;;  %v309_v13 = vpop.xlane.xlu1 %308  ;;  %v320_v10 = vadd.f32 1e-12, %v293_v47  ;;  %1062 = vrsqrt.f32 %v319_v6 }
  0xf8   : > { %v1039_v43 = vpop.eup %1038  ;;  %v356_v46 = vmul.f32 %v1037_v42, %v1460_v32 }
  0xf9   : > { %v348_v50 = vmul.f32 %v1039_v43, %v1463_v33  ;;  %v1041_v16 = vpop.eup %1040 }
  0xfa   : > { %901 = vmatprep.mubr.f32.mxu1 %v356_v46  ;;  %874 = vmatpush3.xpose.msra.mxu0 %v451_v12  ;;  %v449_v55 = vmul.f32 %v1041_v16, %v1430_v20  ;;  %v1043_v58 = vpop.eup %1042  ;;  %v295_v33 = vpop.xlane.xlu0 %294 }
  0xfb   : > { %937 = vmatpush3.xpose.msra.mxu1 %v451_v12  ;;  %875 = vmatprep.subr.mxu0 %v450_v54  ;;  %v311_v32 = vpop.xlane.xlu1 %310  ;;  %v448_v62 = vmul.f32 %v1043_v58, %v1433_v21  ;;  %v1045_v1 = vpop.eup %1044  ;;  %v328_v21 = vadd.f32 1e-12, %v309_v13  ;;  %v321_v22 = vadd.f32 1e-12, %v295_v33 }
  0xfc   : > { %922 = vmatprep.subr.mxu1 %v450_v54  ;;  %889 = vmatprep.mubr.f32.mxu0 %v348_v50  ;;  %v447_v7 = vmul.f32 %v1045_v1, %v1440_v24  ;;  %v1047_v5 = vpop.eup %1046  ;;  %v329_v11 = vadd.f32 1e-12, %v311_v32 }
  0xfd   : > { %v446_v14 = vmul.f32 %v1047_v5, %v1443_v25  ;;  %v1049_v18 = vpop.eup %1048  ;;  %1064 = vrsqrt.f32 %v328_v21 }
  0xfe   : > { %876 = vmatpush3.xpose.msra.mxu0 %v450_v54  ;;  %v297_v4 = vpop.xlane.xlu0 %296  ;;  %1066 = vrsqrt.f32 %v320_v10  ;;  %v445_v9 = vmul.f32 %v1049_v18, %v1450_v28  ;;  %v1051_v27 = vpop.eup %1050 }
  0xff   : > { %938 = vmatpush3.xpose.msra.mxu1 %v450_v54  ;;  %877 = vmatprep.subr.mxu0 %v449_v55  ;;  %v313_v20 = vpop.xlane.xlu1 %312  ;;  %v322_v24 = vadd.f32 1e-12, %v297_v4  ;;  %1068 = vrsqrt.f32 %v329_v11  ;;  %v1053_v25 = vpop.eup %1052  ;;  %v444_v30 = vmul.f32 %v1051_v27, %v1453_v29 }
 0x100   : > { %923 = vmatprep.subr.mxu1 %v449_v55  ;;  %v330_v15 = vadd.f32 1e-12, %v313_v20  ;;  %v1055_v31 = vpop.eup %1054  ;;  %v357_v42 = vmul.f32 %v1053_v25, %v1470_v36 }
 0x101   : > { %v1057_v34 = vpop.eup %1056  ;;  %v349_v39 = vmul.f32 %v1055_v31, %v1473_v37 }
 0x102   : > { %878 = vmatpush3.xpose.msra.mxu0 %v449_v55  ;;  %v299_v19 = vpop.xlane.xlu0 %298  ;;  %1070 = vrsqrt.f32 %v330_v15  ;;  %v1059_v28 = vpop.eup %1058  ;;  %v358_v29 = vmul.f32 %v1057_v34, %v1480_v40 }
 0x103   : > { %939 = vmatpush3.xpose.msra.mxu1 %v449_v55  ;;  %879 = vmatprep.subr.mxu0 %v448_v62  ;;  %v315_v8 = vpop.xlane.xlu1 %314  ;;  %v323_v26 = vadd.f32 1e-12, %v299_v19  ;;  %1072 = vrsqrt.f32 %v322_v24  ;;  %v1061_v35 = vpop.eup %1060  ;;  %v350_v13 = vmul.f32 %v1059_v28, %v1483_v41 }
 0x104   : > { %924 = vmatprep.subr.mxu1 %v448_v62  ;;  %v331_v23 = vadd.f32 1e-12, %v315_v8  ;;  %1074 = vrsqrt.f32 %v321_v22  ;;  %v1063_v12 = vpop.eup %1062  ;;  %v359_v54 = vmul.f32 %v1061_v35, %v1490_v44 }
 0x105   : > { %v351_v51 = vmul.f32 %v1063_v12, %v1493_v45 }
 0x106   : > { %880 = vmatpush3.xpose.msra.mxu0 %v448_v62  ;;  %1076 = vrsqrt.f32 %v331_v23 }
 0x107   : > { %940 = vmatpush3.xpose.msra.mxu1 %v448_v62  ;;  %881 = vmatprep.subr.mxu0 %v447_v7  ;;  %1078 = vrsqrt.f32 %v323_v26 }
 0x108   : > { %925 = vmatprep.subr.mxu1 %v447_v7 }
 0x10a   : > { %882 = vmatpush3.xpose.msra.mxu0 %v447_v7  ;;  %v1065_v38 = vpop.eup %1064 }
 0x10b   : > { %941 = vmatpush3.xpose.msra.mxu1 %v447_v7  ;;  %883 = vmatprep.subr.mxu0 %v446_v14  ;;  %v1067_v43 = vpop.eup %1066  ;;  %v360_v36 = vmul.f32 %v1065_v38, %v1500_v48 }
 0x10c   : > { %926 = vmatprep.subr.mxu1 %v446_v14  ;;  %v1069_v46 = vpop.eup %1068  ;;  %v352_v37 = vmul.f32 %v1067_v43, %v1503_v49 }
 0x10d   : > { %v361_v45 = vmul.f32 %v1069_v46, %v1510_v52 }
 0x10e   : > { %884 = vmatpush3.xpose.msra.mxu0 %v446_v14 }
 0x10f   : > { %942 = vmatpush3.xpose.msra.mxu1 %v446_v14  ;;  %885 = vmatprep.subr.mxu0 %v445_v9  ;;  %v1071_v47 = vpop.eup %1070 }
 0x110   : > { %927 = vmatprep.subr.mxu1 %v445_v9  ;;  %v1073_v50 = vpop.eup %1072  ;;  %v362_v55 = vmul.f32 %v1071_v47, %v1520_v56 }
 0x111   : > { %v1075_v16 = vpop.eup %1074  ;;  %v354_v41 = vmul.f32 %v1073_v50, %v1523_v57 }
 0x112   : > { %886 = vmatpush3.xpose.msra.mxu0 %v445_v9  ;;  %v353_v32 = vmul.f32 %v1075_v16, %v1513_v53 }
 0x113   : > { %943 = vmatpush3.xpose.msra.mxu1 %v445_v9  ;;  %887 = vmatprep.subr.mxu0 %v444_v30  ;;  %v1077_v0 = vpop.eup %1076 }
 0x114   : > { %928 = vmatprep.subr.mxu1 %v444_v30  ;;  %v1079_v40 = vpop.eup %1078  ;;  %v363_v48 = vmul.f32 %v1077_v0, %v1530_v60 }
 0x115   : > { %v355_v44 = vmul.f32 %v1079_v40, %v1533_v61 }
 0x116   : > { %888 = vmatpush3.xpose.msra.mxu0 %v444_v30 }
 0x117   : > { %944 = vmatpush3.xpose.msra.mxu1 %v444_v30 }
 0x119   : > { %890 = vmatmul.mubr.f32.vlgmr.msra.gmra.mxu0 %v349_v39 }
 0x11a   : > { %902 = vmatmul.mubr.f32.vlgmr.msra.gmra.mxu1 %v357_v42  ;;  %892 = vmatprep.mubr.f32.mxu0 %v350_v13 }
 0x11b   : > { %904 = vmatprep.mubr.f32.mxu1 %v358_v29 }
 0x11d   : > { %893 = vmatmul.mubr.f32.gmra.mxu0 %v351_v51 }
 0x11e   : > { %905 = vmatmul.mubr.f32.gmra.mxu1 %v359_v54  ;;  %895 = vmatprep.mubr.f32.mxu0 %v352_v37 }
 0x11f   : > { %907 = vmatprep.mubr.f32.mxu1 %v360_v36 }
 0x121   : > { %896 = vmatmul.mubr.f32.gmra.mxu0 %v353_v32 }
 0x122   : > { %908 = vmatmul.mubr.f32.gmra.mxu1 %v361_v45  ;;  %898 = vmatprep.mubr.f32.mxu0 %v354_v41 }
 0x123   : > { %910 = vmatprep.mubr.f32.mxu1 %v362_v55 }
 0x125   : > { %899 = vmatmul.mubr.f32.gmra.mxu0 %v355_v44 }
 0x126   : > { %911 = vmatmul.mubr.f32.gmra.mxu1 %v363_v48 }
 0x1d9   : > { %v891_v49 = vpop.f32.mrf.mxu0 }
 0x1da   : > { %v903_v58 = vpop.f32.mrf.mxu1  ;;  %v606_v33 = vmul.f32 2.0, %v891_v49 }
 0x1db   : > { %v614_v57 = vmul.f32 2.0, %v903_v58  ;;  %v526_v17 = vpop.f32.mrf.mxu0 }
 0x1dc   : > { %v566_v56 = vpop.f32.mrf.mxu1  ;;  %v622_v53 = vsub.f32 2.0, %v606_v33  ;;  %v605_v52 = vmul.f32 2.0, %v526_v17 }
 0x1dd   : > { %v630_v59 = vsub.f32 2.0, %v614_v57  ;;  %v613_v62 = vmul.f32 2.0, %v566_v56  ;;  %v894_v1 = vpop.f32.mrf.mxu0 }
 0x1de   : > { %v906_v2 = vpop.f32.mrf.mxu1  ;;  %v638_v61 = vmax.f32 %v622_v53, 0.0  ;;  %v621_v60 = vsub.f32 2.0, %v605_v52  ;;  %v608_v63 = vmul.f32 2.0, %v894_v1 }
 0x1df   : > { %v646_v3 = vmax.f32 %v630_v59, 0.0  ;;  %v629_v20 = vsub.f32 2.0, %v613_v62  ;;  %v616_v4 = vmul.f32 2.0, %v906_v2  ;;  %v536_v6 = vpop.f32.mrf.mxu0 }
 0x1e0   : > { %v576_v7 = vpop.f32.mrf.mxu1  ;;  %654 = vst [vmem:[%s1575_s21 + $0x8] sm:$0xff] %v638_v61  ;;  %v637_v5 = vmax.f32 %v621_v60, 0.0  ;;  %v607_v10 = vmul.f32 2.0, %v536_v6  ;;  %v624_v14 = vsub.f32 2.0, %v608_v63 }
 0x1e1   : > { %662 = vst [vmem:[%s1575_s21 + $0x48] sm:$0xff] %v646_v3  ;;  %v645_v21 = vmax.f32 %v629_v20, 0.0  ;;  %v615_v11 = vmul.f32 2.0, %v576_v7  ;;  %v632_v15 = vsub.f32 2.0, %v616_v4  ;;  %v897_v8 = vpop.f32.mrf.mxu0 }
 0x1e2   : > { %v909_v18 = vpop.f32.mrf.mxu1  ;;  %653 = vst [vmem:[%s1575_s21] sm:$0xff] %v637_v5  ;;  %v623_v24 = vsub.f32 2.0, %v607_v10  ;;  %v610_v22 = vmul.f32 2.0, %v897_v8  ;;  %v640_v9 = vmax.f32 %v624_v14, 0.0 }
 0x1e3   : > { %661 = vst [vmem:[%s1575_s21 + $0x40] sm:$0xff] %v645_v21  ;;  %v631_v19 = vsub.f32 2.0, %v615_v11  ;;  %v618_v23 = vmul.f32 2.0, %v909_v18  ;;  %v648_v26 = vmax.f32 %v632_v15, 0.0  ;;  %v546_v27 = vpop.f32.mrf.mxu0 }
 0x1e4   : > { %v586_v25 = vpop.f32.mrf.mxu1  ;;  %v639_v30 = vmax.f32 %v623_v24, 0.0  ;;  %v626_v34 = vsub.f32 2.0, %v610_v22  ;;  %656 = vst [vmem:[%s1575_s21 + $0x18] sm:$0xff] %v640_v9  ;;  %v609_v35 = vmul.f32 2.0, %v546_v27 }
 0x1e5   : > { %v647_v31 = vmax.f32 %v631_v19, 0.0  ;;  %v634_v28 = vsub.f32 2.0, %v618_v23  ;;  %664 = vst [vmem:[%s1575_s21 + $0x58] sm:$0xff] %v648_v26  ;;  %v617_v12 = vmul.f32 2.0, %v586_v25  ;;  %v900_v38 = vpop.f32.mrf.mxu0 }
 0x1e6   : > { %v912_v39 = vpop.f32.mrf.mxu1  ;;  %655 = vst [vmem:[%s1575_s21 + $0x10] sm:$0xff] %v639_v30  ;;  %v642_v42 = vmax.f32 %v626_v34, 0.0  ;;  %v612_v13 = vmul.f32 2.0, %v900_v38  ;;  %v625_v46 = vsub.f32 2.0, %v609_v35 }
 0x1e7   : > { %663 = vst [vmem:[%s1575_s21 + $0x50] sm:$0xff] %v647_v31  ;;  %v650_v43 = vmax.f32 %v634_v28, 0.0  ;;  %v620_v29 = vmul.f32 2.0, %v912_v39  ;;  %v633_v47 = vsub.f32 2.0, %v617_v12  ;;  %v556_v50 = vpop.f32.mrf.mxu0 }
 0x1e8   : > { %v596_v51 = vpop.f32.mrf.mxu1  ;;  %658 = vst [vmem:[%s1575_s21 + $0x28] sm:$0xff] %v642_v42  ;;  %v628_v54 = vsub.f32 2.0, %v612_v13  ;;  %v611_v37 = vmul.f32 2.0, %v556_v50  ;;  %v641_v0 = vmax.f32 %v625_v46, 0.0 }
 0x1e9   : > { %666 = vst [vmem:[%s1575_s21 + $0x68] sm:$0xff] %v650_v43  ;;  %v636_v16 = vsub.f32 2.0, %v620_v29  ;;  %v619_v36 = vmul.f32 2.0, %v596_v51  ;;  %v649_v40 = vmax.f32 %v633_v47, 0.0 }
 0x1ea   : > { %v644_v41 = vmax.f32 %v628_v54, 0.0  ;;  %v627_v32 = vsub.f32 2.0, %v611_v37  ;;  %657 = vst [vmem:[%s1575_s21 + $0x20] sm:$0xff] %v641_v0 }
 0x1eb   : > { %v652_v55 = vmax.f32 %v636_v16, 0.0  ;;  %v635_v45 = vsub.f32 2.0, %v619_v36  ;;  %665 = vst [vmem:[%s1575_s21 + $0x60] sm:$0xff] %v649_v40 }
 0x1ec   : > { %660 = vst [vmem:[%s1575_s21 + $0x38] sm:$0xff] %v644_v41  ;;  %v643_v44 = vmax.f32 %v627_v32, 0.0 }
 0x1ed   : > { %668 = vst [vmem:[%s1575_s21 + $0x78] sm:$0xff] %v652_v55  ;;  %v651_v48 = vmax.f32 %v635_v45, 0.0 }
 0x1ee   : > { %659 = vst [vmem:[%s1575_s21 + $0x30] sm:$0xff] %v643_v44 }
 0x1ef   : > { %667 = vst [vmem:[%s1575_s21 + $0x70] sm:$0xff] %v651_v48 }
 0x1f0   : > { %1149 = shalt.err (!%p1146_p7)
}
 0x1f1   : > { %s1150_s4 = scalar_lea.hbm %s1594_s7, 2048  ;;  %s1154_s6 = scalar_lea.hbm %s1650_s2, 4096 }
 0x1f2   : > { %p1151_p10 = scmp.ne.s32.totalorder %s1594_s7, %s1150_s4  ;;  %p1155_p3 = scmp.lt.s32.totalorder %s1594_s7, %s1650_s2 }
 0x1f3   : > { %p1156_p8 = scmp.lt.s32.totalorder %s1154_s6, %s1150_s4 }
 0x1f4   : > { %p1152_p1 = pnand %p1151_p10, %p1295_p9 }
 0x1f5   : > { %p1157_p0 = por %p1156_p8, %p1155_p3 }
 0x1f6   : > { %p1153_p13 = pneg %p1152_p1 }
 0x1f8   : > { %p1158_p2 = pnand %p1157_p0, %p1153_p13 }
 0x1fa   : > { %1161 = shalt.err (!%p1158_p2)
}
 0x1fb   : > { %s1227_s18 = smov 128   ;;  %s1228_s21 = smov 8  }
 0x1fc   : > { %949 = dma.vmem_to_hbm [thread:$0]  (%p1295_p9), %s1596_s28, 2048, %s1594_s7, %s670_s12, %s1227_s18, %s1227_s18, %s1228_s21  }
 0x1fd PF: > { %s701_s19 = sand.u32 1, %s1200_s9   ;;  %p959_p5 = pnand %p806_p12, %p1302_p11 }
 0x1fe   : > { %s702_s29 = scalar_lea.sflag [#allocation4], %s701_s19 }
 0x1ff   : > { %p960_p6 = pneg %p959_p5 }
 0x201   : > { %1195 = dma.done.wait (%p960_p6), %s702_s29, 2048  }
 0x202   : > { %1197 = vsyncadd (%p960_p6), %s702_s29, 4294965248  ;;  %s21_s14 = sadd.s32 1, %s1220_s14   ;;  %s1657_s9 = smov %s1204_s10 }
 0x203   : > { %p18_p4 = scmp.ge.s32.totalorder %s21_s14, 4   ;;  %s1658_s10 = smov %s1208_s11 }
 0x204   : > { %s1659_s11 = smov %s1300_s23  ;;  %s1660_s12 = smov %s1216_s13 }
 0x205   : > { %s1661_s13 = smov %s1663_s17  ;;  %20 = sbr.rel (!%p18_p4) target bundleno = 8 (0x8), region = 86 }
 0x20a   :  { %707 = vsyncpa [#allocation3], 1 }
 0x20b   :  { %709 = vsyncpa [#allocation3 + $0x1], 1 }
 0x20c   :  { %710 = vsyncpa [#allocation6], 1 }
 0x20d   :  { %712 = vsyncpa [#allocation6 + $0x1], 1 }
 0x20e   :  { %713 = vsyncpa [#allocation4], 1 }
 0x20f   :  { %715 = vsyncpa [#allocation4 + $0x1], 1 }

</bundles_post_ra>
